<compile_context>
chip_gen: v5e
topology: v5e:2x2
jax: 0.10.0
libtpu: 0.0.40
codegen_flags: <defaults>
</compile_context>

<pallas_src>
import jax
import jax.numpy as jnp
from jax.experimental import pallas as pl
from jax.experimental.pallas import tpu as pltpu


# ---------------- problem sizes (small, deterministic) ----------------
NSIM = 128        # number of parallel simulations (batch, mapped to the 128-lane axis)
NQ = 2            # generalized positions
NV = 2            # generalized velocities (== control dim)
NX = NQ + NV      # state dim
HENC = 32         # encoder output dim
HID = 32          # policy hidden dim
T_STEPS = 8       # fused RHS evaluations per kernel launch (grid axis)


def _dyn_kernel(ts_ref,                      # (T,)  f32 time schedule, SMEM
                x_ref,                       # (1, NX, NSIM) state block (features x sims)
                wencT_ref, benc_ref,         # (HENC, NX), (HENC, 1)
                w1T_ref, w1t_ref, b1_ref,    # (HID, HENC), (HID, 1), (HID, 1)
                w2T_ref, b2_ref,             # (NV, HID), (NV, 1)
                out_ref):                    # (1, NX, NSIM)
    i = pl.program_id(0)
    t = ts_ref[i]                            # scalar time for this grid step (SMEM load)
    x = x_ref[0]                             # (NX, NSIM): features on sublanes, sims on lanes

    # ---- encoder: x_enc = tanh(W_enc^T @ x + b_enc) ----
    x_enc = jnp.tanh(
        jnp.dot(wencT_ref[...], x, preferred_element_type=jnp.float32) + benc_ref[...]
    )                                        # (HENC, NSIM)

    # ---- policy_func(t, x_enc): MLP with t injected additively (== concat([x_enc, t]) @ W) ----
    h = jnp.tanh(
        jnp.dot(w1T_ref[...], x_enc, preferred_element_type=jnp.float32)
        + t * w1t_ref[...]
        + b1_ref[...]
    )                                        # (HID, NSIM)
    acc = jnp.dot(w2T_ref[...], h, preferred_element_type=jnp.float32) + b2_ref[...]
    # acc: (NV, NSIM)

    # ---- dynamics(x, acc): double integrator  xd = [qvel; acc] ----
    qvel = x[NQ:NX, :]                       # (NV, NSIM)
    # single full-width, lane-dense store (last dim = NSIM = 128 -> unmasked vst)
    out_ref[0] = jnp.concatenate([qvel, acc], axis=0)


def _transpose_params(p):
    """Transpose params to the (features-on-sublanes, batch-on-lanes) kernel layout."""
    return {
        "W_encT": p["W_enc"].T,   # (HENC, NX)
        "b_encT": p["b_enc"].T,   # (HENC, 1)
        "W1T":    p["W1"].T,      # (HID, HENC)
        "w1_tT":  p["w1_t"].T,    # (HID, 1)
        "b1T":    p["b1"].T,      # (HID, 1)
        "W2T":    p["W2"].T,      # (NV, HID)
        "b2T":    p["b2"].T,      # (NV, 1)
    }


@jax.jit
def controlled_dynamical_system_rhs_batch(ts, xs, params):
    """Fused evaluation of T RHS calls in one kernel.

    ts: (T,) f32 times, xs: (T, NSIM, NX) f32 states -> xd: (T, NSIM, NX) f32.
    """
    t_steps = xs.shape[0]
    xs_t = jnp.swapaxes(xs, 1, 2)            # (T, NX, NSIM): lane-dense layout
    tp = _transpose_params(params)

    grid_spec = pltpu.PrefetchScalarGridSpec(
        num_scalar_prefetch=0,
        grid=(t_steps,),
        in_specs=[
            pl.BlockSpec(memory_space=pltpu.MemorySpace.SMEM),        # ts: whole schedule in SMEM
            pl.BlockSpec((1, NX, NSIM), lambda i: (i, 0, 0)),         # x block for this step
            # weights: full-array blocks with constant index maps -> DMA'd once, VMEM-resident
            pl.BlockSpec((HENC, NX), lambda i: (0, 0)),
            pl.BlockSpec((HENC, 1), lambda i: (0, 0)),
            pl.BlockSpec((HID, HENC), lambda i: (0, 0)),
            pl.BlockSpec((HID, 1), lambda i: (0, 0)),
            pl.BlockSpec((HID, 1), lambda i: (0, 0)),
            pl.BlockSpec((NV, HID), lambda i: (0, 0)),
            pl.BlockSpec((NV, 1), lambda i: (0, 0)),
        ],
        out_specs=pl.BlockSpec((1, NX, NSIM), lambda i: (i, 0, 0)),
    )

    out_t = pl.pallas_call(
        _dyn_kernel,
        out_shape=jax.ShapeDtypeStruct((t_steps, NX, NSIM), jnp.float32),
        grid_spec=grid_spec,
        compiler_params=pltpu.CompilerParams(
            dimension_semantics=("parallel",),   # shard the T evaluations across TCs (v7x: 2x)
        ),
    )(ts.astype(jnp.float32), xs_t,
      tp["W_encT"], tp["b_encT"],
      tp["W1T"], tp["w1_tT"], tp["b1T"],
      tp["W2T"], tp["b2T"])

    return jnp.swapaxes(out_t, 1, 2)         # back to (T, NSIM, NX)


def controlled_dynamical_system_forward(t, x, params):
    """Module forward(): scalar t, x (NSIM, NX) (PyTorch [nsim,1,nx] flattened) -> xd (NSIM, NX)."""
    ts = jnp.reshape(jnp.asarray(t, jnp.float32), (1,))
    return controlled_dynamical_system_rhs_batch(ts, x[None], params)[0]


def make_params(key):
    ks = jax.random.split(key, 7)
    s = 0.1
    return {
        "W_enc": s * jax.random.normal(ks[0], (NX, HENC), jnp.float32),
        "b_enc": s * jax.random.normal(ks[1], (1, HENC), jnp.float32),
        "W1":    s * jax.random.normal(ks[2], (HENC, HID), jnp.float32),
        "w1_t":  s * jax.random.normal(ks[3], (1, HID), jnp.float32),   # time-input row of W1
        "b1":    s * jax.random.normal(ks[4], (1, HID), jnp.float32),
        "W2":    s * jax.random.normal(ks[5], (HID, NV), jnp.float32),
        "b2":    s * jax.random.normal(ks[6], (1, NV), jnp.float32),
    }


def reference_forward(t, x, p):
    """Pure-JAX reference (same math as the PyTorch module with these submodules)."""
    x_enc = jnp.tanh(x @ p["W_enc"] + p["b_enc"])
    h = jnp.tanh(x_enc @ p["W1"] + t * p["w1_t"] + p["b1"])
    acc = h @ p["W2"] + p["b2"]
    qvel = x[:, NQ:NX]
    return jnp.concatenate([qvel, acc], axis=-1)


if __name__ == "__main__":
    key = jax.random.PRNGKey(0)
    kx, kp = jax.random.split(key)
    params = make_params(kp)

    # A batch of T_STEPS RHS evaluations (e.g. RK stages / consecutive timesteps), each over
    # NSIM parallel simulations with state [NSIM, NX] (PyTorch [nsim, 1, nx] flattened).
    xs = jax.random.normal(kx, (T_STEPS, NSIM, NX), jnp.float32)
    ts = jnp.linspace(0.0, 1.0, T_STEPS, dtype=jnp.float32)

    xd = controlled_dynamical_system_rhs_batch(ts, xs, params)
    xd = jax.block_until_ready(xd)

    xd_ref = jax.vmap(reference_forward, in_axes=(0, 0, None))(ts, xs, params)
    assert xd.shape == (T_STEPS, NSIM, NX)
    assert jnp.allclose(xd, xd_ref, atol=1e-4, rtol=1e-4), "batched mismatch vs JAX reference"

    # Single-call module forward(t, x) semantics (T=1 special case).
    t0 = jnp.float32(0.5)
    xd1 = controlled_dynamical_system_forward(t0, xs[0], params)
    xd1 = jax.block_until_ready(xd1)
    xd1_ref = reference_forward(t0, xs[0], params)
    assert xd1.shape == (NSIM, NX)
    assert jnp.allclose(xd1, xd1_ref, atol=1e-4, rtol=1e-4), "single-step mismatch vs JAX reference"

    print("KERNEL_OK")
</pallas_src>

<mosaic_0001>
module attributes {stable_mosaic.version = 11 : i64} {
  func.func @_dyn_kernel(%arg0: i32, %arg1: memref<8xf32, #tpu.memory_space<smem>>, %arg2: memref<1x4x128xf32, #tpu.memory_space<vmem>>, %arg3: memref<32x4xf32, #tpu.memory_space<vmem>>, %arg4: memref<32x1xf32, #tpu.memory_space<vmem>>, %arg5: memref<32x32xf32, #tpu.memory_space<vmem>>, %arg6: memref<32x1xf32, #tpu.memory_space<vmem>>, %arg7: memref<32x1xf32, #tpu.memory_space<vmem>>, %arg8: memref<2x32xf32, #tpu.memory_space<vmem>>, %arg9: memref<2x1xf32, #tpu.memory_space<vmem>>, %arg10: memref<1x4x128xf32, #tpu.memory_space<vmem>>) attributes {dimension_semantics = [#tpu.dimension_semantics<parallel>], iteration_bounds = array<i64: 8>, scalar_prefetch = 0 : i64, scratch_operands = 0 : i64, tpu.core_type = #tpu.core_type<tc>, window_params = [{transform_indices = @transform_0, window_bounds = array<i64: 8>}, {transform_indices = @transform_1, window_bounds = array<i64: 1, 4, 128>}, {pipeline_mode = #tpu.pipeline_mode<synchronous>, transform_indices = @transform_2, window_bounds = array<i64: 32, 4>}, {pipeline_mode = #tpu.pipeline_mode<synchronous>, transform_indices = @transform_3, window_bounds = array<i64: 32, 1>}, {pipeline_mode = #tpu.pipeline_mode<synchronous>, transform_indices = @transform_4, window_bounds = array<i64: 32, 32>}, {pipeline_mode = #tpu.pipeline_mode<synchronous>, transform_indices = @transform_5, window_bounds = array<i64: 32, 1>}, {pipeline_mode = #tpu.pipeline_mode<synchronous>, transform_indices = @transform_6, window_bounds = array<i64: 32, 1>}, {pipeline_mode = #tpu.pipeline_mode<synchronous>, transform_indices = @transform_7, window_bounds = array<i64: 2, 32>}, {pipeline_mode = #tpu.pipeline_mode<synchronous>, transform_indices = @transform_8, window_bounds = array<i64: 2, 1>}, {transform_indices = @transform_9, window_bounds = array<i64: 1, 4, 128>}]} {
    %0 = arith.index_cast %arg0 : i32 to index
    %1 = memref.load %arg1[%0] : memref<8xf32, #tpu.memory_space<smem>>
    %c0 = arith.constant 0 : index
    %c0_0 = arith.constant 0 : index
    %c0_1 = arith.constant 0 : index
    %2 = vector.load %arg2[%c0, %c0_0, %c0_1] : memref<1x4x128xf32, #tpu.memory_space<vmem>>, vector<1x4x128xf32>
    %3 = vector.shape_cast %2 : vector<1x4x128xf32> to vector<4x128xf32>
    %c0_2 = arith.constant 0 : index
    %c0_3 = arith.constant 0 : index
    %4 = vector.load %arg3[%c0_2, %c0_3] : memref<32x4xf32, #tpu.memory_space<vmem>>, vector<32x4xf32>
    %cst = arith.constant dense<0.000000e+00> : vector<32x128xf32>
    %5 = tpu.matmul %4, %3, %cst {dimension_numbers = #tpu.dot_dimension_numbers<[1], [0], [0], [1], [0, 0, 1, 1], [], []>} : vector<32x4xf32>, vector<4x128xf32>, vector<32x128xf32> -> vector<32x128xf32>
    %c0_4 = arith.constant 0 : index
    %c0_5 = arith.constant 0 : index
    %6 = vector.load %arg4[%c0_4, %c0_5] : memref<32x1xf32, #tpu.memory_space<vmem>>, vector<32x1xf32>
    %7 = vector.broadcast %6 : vector<32x1xf32> to vector<32x128xf32>
    %8 = arith.addf %5, %7 : vector<32x128xf32>
    %9 = math.tanh %8 : vector<32x128xf32>
    %c0_6 = arith.constant 0 : index
    %c0_7 = arith.constant 0 : index
    %10 = vector.load %arg5[%c0_6, %c0_7] : memref<32x32xf32, #tpu.memory_space<vmem>>, vector<32x32xf32>
    %cst_8 = arith.constant dense<0.000000e+00> : vector<32x128xf32>
    %11 = tpu.matmul %10, %9, %cst_8 {dimension_numbers = #tpu.dot_dimension_numbers<[1], [0], [0], [1], [0, 0, 1, 1], [], []>} : vector<32x32xf32>, vector<32x128xf32>, vector<32x128xf32> -> vector<32x128xf32>
    %c0_9 = arith.constant 0 : index
    %c0_10 = arith.constant 0 : index
    %12 = vector.load %arg6[%c0_9, %c0_10] : memref<32x1xf32, #tpu.memory_space<vmem>>, vector<32x1xf32>
    %13 = vector.broadcast %1 : f32 to vector<32x1xf32>
    %14 = arith.mulf %13, %12 : vector<32x1xf32>
    %15 = vector.broadcast %14 : vector<32x1xf32> to vector<32x128xf32>
    %16 = arith.addf %11, %15 : vector<32x128xf32>
    %c0_11 = arith.constant 0 : index
    %c0_12 = arith.constant 0 : index
    %17 = vector.load %arg7[%c0_11, %c0_12] : memref<32x1xf32, #tpu.memory_space<vmem>>, vector<32x1xf32>
    %18 = vector.broadcast %17 : vector<32x1xf32> to vector<32x128xf32>
    %19 = arith.addf %16, %18 : vector<32x128xf32>
    %20 = math.tanh %19 : vector<32x128xf32>
    %c0_13 = arith.constant 0 : index
    %c0_14 = arith.constant 0 : index
    %21 = vector.load %arg8[%c0_13, %c0_14] : memref<2x32xf32, #tpu.memory_space<vmem>>, vector<2x32xf32>
    %cst_15 = arith.constant dense<0.000000e+00> : vector<2x128xf32>
    %22 = tpu.matmul %21, %20, %cst_15 {dimension_numbers = #tpu.dot_dimension_numbers<[1], [0], [0], [1], [0, 0, 1, 1], [], []>} : vector<2x32xf32>, vector<32x128xf32>, vector<2x128xf32> -> vector<2x128xf32>
    %c0_16 = arith.constant 0 : index
    %c0_17 = arith.constant 0 : index
    %23 = vector.load %arg9[%c0_16, %c0_17] : memref<2x1xf32, #tpu.memory_space<vmem>>, vector<2x1xf32>
    %24 = vector.broadcast %23 : vector<2x1xf32> to vector<2x128xf32>
    %25 = arith.addf %22, %24 : vector<2x128xf32>
    %26 = vector.extract_strided_slice %3 {offsets = [2, 0], sizes = [2, 128], strides = [1, 1]} : vector<4x128xf32> to vector<2x128xf32>
    %27 = tpu.concatenate %26, %25 in 0 : vector<2x128xf32>, vector<2x128xf32> -> vector<4x128xf32>
    %c0_18 = arith.constant 0 : index
    %c0_19 = arith.constant 0 : index
    %c0_20 = arith.constant 0 : index
    %28 = vector.load %arg10[%c0_18, %c0_19, %c0_20] : memref<1x4x128xf32, #tpu.memory_space<vmem>>, vector<1x4x128xf32>
    %29 = vector.shape_cast %28 : vector<1x4x128xf32> to vector<4x128xf32>
    %30 = vector.shape_cast %27 : vector<4x128xf32> to vector<1x4x128xf32>
    tpu.vector_store %arg10[%c0_18, %c0_19, %c0_20], %30 {strides = array<i32>} : memref<1x4x128xf32, #tpu.memory_space<vmem>>, vector<1x4x128xf32>,
    return
  }
  func.func @transform_0(%arg0: i32) -> i32 {
    %c0_i32 = arith.constant 0 : i32
    %c0_i32_0 = arith.constant 0 : i32
    return %c0_i32 : i32
  }
  func.func @transform_1(%arg0: i32) -> (i32, i32, i32) {
    %c0_i32 = arith.constant 0 : i32
    %c0_i32_0 = arith.constant 0 : i32
    %c0_i32_1 = arith.constant 0 : i32
    return %arg0, %c0_i32, %c0_i32_0 : i32, i32, i32
  }
  func.func @transform_2(%arg0: i32) -> (i32, i32) {
    %c0_i32 = arith.constant 0 : i32
    %c0_i32_0 = arith.constant 0 : i32
    %c0_i32_1 = arith.constant 0 : i32
    return %c0_i32, %c0_i32_0 : i32, i32
  }
  func.func @transform_3(%arg0: i32) -> (i32, i32) {
    %c0_i32 = arith.constant 0 : i32
    %c0_i32_0 = arith.constant 0 : i32
    %c0_i32_1 = arith.constant 0 : i32
    return %c0_i32, %c0_i32_0 : i32, i32
  }
  func.func @transform_4(%arg0: i32) -> (i32, i32) {
    %c0_i32 = arith.constant 0 : i32
    %c0_i32_0 = arith.constant 0 : i32
    %c0_i32_1 = arith.constant 0 : i32
    return %c0_i32, %c0_i32_0 : i32, i32
  }
  func.func @transform_5(%arg0: i32) -> (i32, i32) {
    %c0_i32 = arith.constant 0 : i32
    %c0_i32_0 = arith.constant 0 : i32
    %c0_i32_1 = arith.constant 0 : i32
    return %c0_i32, %c0_i32_0 : i32, i32
  }
  func.func @transform_6(%arg0: i32) -> (i32, i32) {
    %c0_i32 = arith.constant 0 : i32
    %c0_i32_0 = arith.constant 0 : i32
    %c0_i32_1 = arith.constant 0 : i32
    return %c0_i32, %c0_i32_0 : i32, i32
  }
  func.func @transform_7(%arg0: i32) -> (i32, i32) {
    %c0_i32 = arith.constant 0 : i32
    %c0_i32_0 = arith.constant 0 : i32
    %c0_i32_1 = arith.constant 0 : i32
    return %c0_i32, %c0_i32_0 : i32, i32
  }
  func.func @transform_8(%arg0: i32) -> (i32, i32) {
    %c0_i32 = arith.constant 0 : i32
    %c0_i32_0 = arith.constant 0 : i32
    %c0_i32_1 = arith.constant 0 : i32
    return %c0_i32, %c0_i32_0 : i32, i32
  }
  func.func @transform_9(%arg0: i32) -> (i32, i32, i32) {
    %c0_i32 = arith.constant 0 : i32
    %c0_i32_0 = arith.constant 0 : i32
    %c0_i32_1 = arith.constant 0 : i32
    return %arg0, %c0_i32, %c0_i32_0 : i32, i32, i32
  }
}

</mosaic_0001>

<bundles_post_ra>
// kernel: controlled_dynamical_system_rhs_batch.1
= control target key start
LH: loop header
LB: loop body
LE: loop exit
PB: predicated region body
PF: predicated region fallthrough
CT: control target
= control target key end

     0   :  { %14 = vsyncpa [#allocation4], 0  ;;  %s1056_s0 = inlined_call_operand.vmem [shape: f32[8], index: 0, kind: input, shape index: {}]   ;;  %s1057_s1 = inlined_call_operand.vmem [shape: f32[8,4,128], index: 1, kind: input, shape index: {}]   ;;  %s1058_s2 = inlined_call_operand.vmem [shape: f32[32,4], index: 2, kind: input, shape index: {}]   ;;  %s1059_s3 = inlined_call_operand.vmem [shape: f32[32,1], index: 3, kind: input, shape index: {}]   ;;  %s1060_s4 = inlined_call_operand.vmem [shape: f32[32,32], index: 4, kind: input, shape index: {}]   ;;  %s1061_s5 = inlined_call_operand.vmem [shape: f32[32,1], index: 5, kind: input, shape index: {}]   ;;  %s1062_s6 = inlined_call_operand.vmem [shape: f32[32,1], index: 6, kind: input, shape index: {}]   ;;  %s1063_s7 = inlined_call_operand.vmem [shape: f32[2,32], index: 7, kind: input, shape index: {}]   ;;  %s1064_s8 = inlined_call_operand.vmem [shape: f32[2,1], index: 8, kind: input, shape index: {}]   ;;  %s1065_s9 = inlined_call_operand.hbm [shape: f32[8,4,128], index: 9, kind: output, shape index: {}]  }
   0x1   :  { %15 = vsyncpa [#allocation3], 0 }
   0x2   :  { %17 = vsyncpa [#allocation3 + $0x1], 0  ;;  %s886_s30 = smov 0   ;;  %s888_s10 = smov 0  }
   0x3   :  { %s890_s11 = smov 0   ;;  %s892_s12 = smov 0  }
   0x4 LB: > { %s907_s13 = sadd.s32 4294967295, %s832_s12   ;;  %s654_s14 = sadd.s32 4294967294, %s832_s12   ;;  %s832_s12 = sphi %s892_s12, %s1071_s12   ;;  %s828_s11 = sphi %s890_s11, %s1070_s11   ;;  %s824_s10 = sphi %s888_s10, %s1069_s10   ;;  %s820_s30 = sphi %s886_s30, %s1068_s30  }
   0x5   : > { %s911_s15 = sadd.s32 1, %s832_s12   ;;  %s224_s16 = sadd.s32 1, %s828_s11 }
   0x6   : > { %s221_s17 = ssub.s32 %s832_s12, %s911_s15  ;;  %p234_p0 = scmp.ne.s32.totalorder %s828_s11, %s824_s10 }
   0x7   : > { %p222_p1 = scmp.eq.s32.totalorder %s221_s17, 0  ;;  %p235_p2 = scmp.eq.s32.totalorder %s907_s13, 7 }
   0x8   : > { %p240_p3 = scmp.ne.s32.totalorder %s824_s10, %s820_s30  ;;  %p241_p4 = scmp.eq.s32.totalorder %s654_s14, 7 }
   0x9   : > { %s922_s18 = scalar_select %p222_p1, %s828_s11, %s224_s16  }
   0xa   : > { %p924_p5 = por %p235_p2, %p234_p0  ;;  %p928_p6 = por %p241_p4, %p240_p3 }
   0xb   : > { %p655_p7 = scmp.ge.s32.totalorder %s832_s12, 1  ;;  %p248_p8 = scmp.lt.s32.totalorder %s832_s12, 9 }
   0xc   : > { %p695_p9 = scmp.eq.s32.totalorder %s907_s13, 0  ;;  %s260_s23 = sshll.u32 %s1056_s0, 4  ;;  %s261_s23 = int_to_ptr.vmem [resolvable:$true] %s260_s23 }
   0xd   : > { %p249_p10 = pnand %p655_p7, %p248_p8  ;;  %s834_s24 = smov [#allocation2]  }
   0xf   : > { %p687_p11 = pneg %p249_p10  ;;  %301 = sbr.rel (%p249_p10) target bundleno = 485 (0x1e5), region = 56 }
  0x11   : > { %p688_p12 = pnand %p695_p9, %p687_p11 }
  0x13   : > { %690 = dma.vmem_to_smem (!%p688_p12), %s261_s23, 16, %s834_s24, [#allocation4]  }
  0x14   : > { %811 = dma.done.wait (%p695_p9), [#allocation4], 16  }
  0x15   : > { %813 = vsyncadd (%p695_p9), [#allocation4], 4294967280 }
  0x16   : > { %308 = sfence }
  0x17   : > { %v351_v0 = vld [vmem:[%s1059_s3 + $0x18] sm:$0xff]  ;;  %v349_v1 = vld [vmem:[%s1059_s3 + $0x8] sm:$0xff]  ;;  %p338_p13 = scmp.lt.s32.totalorder %s907_s13, 7  ;;  %v835_v2 = vmov 0   ;;  %s342_s14 = sld [smem:[#allocation2 + %s907_s13]]  ;;  %vm385_vm0 = vcmask 1043456  }
  0x18   : > { %732 = vset.pattern.permute.xlu0 %v835_v2  ;;  %733 = vset.pattern.permute.xlu1 %v835_v2  ;;  %v344_v3 = vld [vmem:[%s1058_s2] sm:$0xff]  ;;  %vm372_vm1 = vcmask 31744   ;;  %v347_v4 = vld [vmem:[%s1058_s2 + $0x18] sm:$0xff]  ;;  %v350_v6 = vld [vmem:[%s1059_s3 + $0x10] sm:$0xff]  ;;  %vm455_vm2 = vcmask 261120   ;;  %s335_s28 = sand.u32 1, %s824_s10  }
  0x19   : > { %369 = vperm.xlu0 %732, %v351_v0   ;;  %359 = vperm.xlu1 %733, %v349_v1   ;;  %s339_s29 = scalar_select %p338_p13, %s907_s13, 7  ;;  %v348_v7 = vld [vmem:[%s1059_s3] sm:$0xff]  ;;  %v427_v8 = vld [vmem:[%s1061_s5 + $0x8] sm:$0xff]  ;;  %v500_v12 = vld [vmem:[%s1062_s6 + $0x18] sm:$0xff]  ;;  %vm564_vm3 = vcmask 1041408  }
  0x1a   : > { %734 = vset.pattern.permute.xlu2 %v835_v2  ;;  %v345_v10 = vld [vmem:[%s1058_s2 + $0x8] sm:$0xff]  ;;  %v426_v13 = vld [vmem:[%s1061_s5] sm:$0xff]  ;;  %v346_v14 = vld [vmem:[%s1058_s2 + $0x10] sm:$0xff] }
  0x1b   : > { %s661_s16 = sshll.u32 %s339_s29, 2  ;;  %v498_v16 = vld [vmem:[%s1062_s6 + $0x8] sm:$0xff]  ;;  %v530_v17 = vld [vmem:[%s1064_s8] sm:$0x3]  ;;  %v429_v19 = vld [vmem:[%s1061_s5 + $0x18] sm:$0xff]  ;;  %s660_s29 = sshll.u32 %s335_s28, 2 }
  0x1c   : > { %s341_s22 = scalar_lea.vmem %s1057_s1, %s661_s16  ;;  %v428_v26 = vld [vmem:[%s1061_s5 + $0x10] sm:$0xff]  ;;  %v422_v38 = vld [vmem:[%s1060_s4] sm:$0xff]  ;;  %v423_v42 = vld [vmem:[%s1060_s4 + $0x8] sm:$0xff] }
  0x1d   : > { %v956_v5 = vld [vmem:[%s341_s22] sm:$0xf]  ;;  %v430_v9 = vstv %s342_s14  ;;  %v499_v35 = vld [vmem:[%s1062_s6 + $0x10] sm:$0xff]  ;;  %v425_v43 = vld [vmem:[%s1060_s4 + $0x18] sm:$0xff]  ;;  %s673_s14 = sshll.u32 %s907_s13, 2  ;;  %s337_s22 = scalar_lea.vmem [#allocation5], %s660_s29 }
  0x1e   : > { %662 = vmatpush.msk.msra.mxu0 %vm385_vm0, %v956_v5  ;;  %676 = vmatpush.msk.msra.mxu2 %vm385_vm0, %v956_v5  ;;  %v432_v11 = vmul.f32 %v430_v9, %v427_v8  ;;  %v431_v15 = vmul.f32 %v430_v9, %v426_v13  ;;  %v434_v22 = vmul.f32 %v430_v9, %v429_v19  ;;  %v424_v39 = vld [vmem:[%s1060_s4 + $0x10] sm:$0xff]  ;;  %v497_v41 = vld [vmem:[%s1062_s6] sm:$0xff]  ;;  %s578_s21 = scalar_lea.hbm %s1065_s9, %s673_s14  ;;  %v559_v8 = vrot.slane %v956_v5, 2  ;;  %s580_s23 = sshll.u32 %s337_s22, 4  ;;  %s581_s23 = int_to_ptr.vmem [resolvable:$true] %s580_s23 }
  0x1f   : > { %663 = vmatmul.msk.f32.vlgmr.msra.gmra.mxu0 %vm372_vm1, %v344_v3  ;;  %666 = vmatmul.msk.f32.vlgmr.msra.gmra.mxu2 %vm372_vm1, %v347_v4  ;;  %v433_v27 = vmul.f32 %v430_v9, %v428_v26  ;;  %v529_v3 = vld [vmem:[%s1063_s7] sm:$0x3]  ;;  %s582_s24 = sshll.u32 %s578_s21, 4  ;;  %s568_s13 = scalar_lea.sflag [#allocation3], %s335_s28  ;;  %s583_s24 = int_to_ptr.hbm [resolvable:$true] %s582_s24 }
  0x20   : > { %452 = vperm.xlu2 %734, %v434_v22   ;;  %s780_s25 = sshra.s32 %s583_s24, 4  ;;  %s786_s29 = scalar_lea.hbm %s1065_s9, 32  ;;  %s781_s25 = int_to_ptr.hbm [resolvable:$true] %s780_s25 }
  0x21   : > { %364 = vperm.xlu0 %732, %v350_v6   ;;  %354 = vperm.xlu1 %733, %v348_v7   ;;  %s782_s26 = scalar_lea.hbm %s781_s25, 4  ;;  %p787_p3 = scmp.lt.s32.totalorder %s781_s25, %s1065_s9 }
  0x22   : > { %p783_p0 = scmp.ne.s32.totalorder %s781_s25, %s782_s26  ;;  %p788_p4 = scmp.lt.s32.totalorder %s786_s29, %s782_s26 }
  0x24   : > { %p784_p1 = pnand %p783_p0, %p924_p5  ;;  %p789_p7 = por %p788_p4, %p787_p3 }
  0x26   : > { %p785_p2 = pneg %p784_p1 }
  0x27   : > { %664 = vmatmul.msk.f32.gmra.mxu0 %vm372_vm1, %v345_v10 }
  0x28   : > { %447 = vperm.xlu2 %734, %v433_v27   ;;  %p790_p8 = pnand %p789_p7, %p785_p2 }
  0x29   : > { %518 = vperm.xlu0 %732, %v500_v12   ;;  %442 = vperm.xlu1 %733, %v432_v11  }
  0x2f   : > { %665 = vmatmul.msk.f32.gmra.mxu0 %vm372_vm1, %v346_v14 }
  0x30   : > { %513 = vperm.xlu2 %734, %v499_v35  }
  0x31   : > { %437 = vperm.xlu0 %732, %v431_v15   ;;  %508 = vperm.xlu1 %733, %v498_v16  }
  0x38   : > { %503 = vperm.xlu2 %734, %v497_v41  }
  0x39   : > { %533 = vperm.xlu0 %732, %v530_v17  }
  0x7a   : > { %v453_v44 = vpop.permute.xlu2 %452 }
  0x82   : > { %v448_v45 = vpop.permute.xlu2 %447 }
  0x8a   : > { %v514_v50 = vpop.permute.xlu2 %513 }
  0x8b   : > { %v370_v20 = vpop.permute.xlu0 %369  ;;  %v360_v24 = vpop.permute.xlu1 %359 }
  0x92   : > { %v504_v62 = vpop.permute.xlu2 %503 }
  0x93   : > { %v365_v29 = vpop.permute.xlu0 %364  ;;  %v355_v33 = vpop.permute.xlu1 %354 }
  0x9b   : > { %v519_v47 = vpop.permute.xlu0 %518  ;;  %v443_v49 = vpop.permute.xlu1 %442 }
  0x9c   : > { %v406_v18 = vpop.f32.mrf.mxu0 }
  0x9d   : > { %v407_v34 = vadd.f32 %v406_v18, %v355_v33 }
  0xa2   : > { %v415_v21 = vpop.f32.mrf.mxu2 }
  0xa3   : > { %v416_v23 = vadd.f32 %v415_v21, %v370_v20  ;;  %v438_v56 = vpop.permute.xlu0 %437  ;;  %v509_v60 = vpop.permute.xlu1 %508 }
  0xa4   : > { %v409_v25 = vpop.f32.mrf.mxu0 }
  0xa5   : > { %735 = vtanh.f32 %v416_v23  ;;  %v410_v31 = vadd.f32 %v409_v25, %v360_v24 }
  0xab   : > { %v736_v28 = vpop.eup %735  ;;  %v534_v6 = vpop.permute.xlu0 %533 }
  0xac   : > { %v412_v30 = vpop.f32.mrf.mxu0  ;;  %480 = vmatpush.msra.mxu1 %v736_v28  ;;  %677 = vmatpush.msra.mxu3 %v736_v28 }
  0xad   : > { %v413_v32 = vadd.f32 %v412_v30, %v365_v29 }
  0xaf   : > { %737 = vtanh.f32 %v413_v32 }
  0xb0   : > { %739 = vtanh.f32 %v410_v31 }
  0xb1   : > { %741 = vtanh.f32 %v407_v34 }
  0xb5   : > { %v738_v36 = vpop.eup %737 }
  0xb6   : > { %481 = vmatpush.msra.mxu1 %v738_v36  ;;  %678 = vmatpush.msra.mxu3 %v738_v36  ;;  %v740_v37 = vpop.eup %739 }
  0xb7   : > { %v742_v40 = vpop.eup %741 }
  0xb8   : > { %482 = vmatpush.msra.mxu1 %v740_v37  ;;  %679 = vmatpush.msra.mxu3 %v740_v37 }
  0xba   : > { %483 = vmatpush.msra.mxu1 %v742_v40  ;;  %680 = vmatpush.msra.mxu3 %v742_v40 }
  0xbb   : > { %667 = vmatmul.msk.f32.vlgmr.msra.gmra.mxu1 %vm455_vm2, %v422_v38  ;;  %669 = vmatmul.msk.f32.vlgmr.msra.gmra.mxu3 %vm455_vm2, %v424_v39 }
  0xc3   : > { %668 = vmatmul.msk.f32.gmra.mxu1 %vm455_vm2, %v423_v42  ;;  %670 = vmatmul.msk.f32.gmra.mxu3 %vm455_vm2, %v425_v43 }
 0x138   : > { %v485_v46 = vpop.f32.mrf.mxu1 }
 0x139   : > { %v486_v57 = vadd.f32 %v485_v46, %v438_v56 }
 0x13b   : > { %v521_v63 = vadd.f32 %v504_v62, %v486_v57 }
 0x13e   : > { %v491_v48 = vpop.f32.mrf.mxu3 }
 0x13f   : > { %v492_v52 = vadd.f32 %v491_v48, %v448_v45 }
 0x140   : > { %v488_v51 = vpop.f32.mrf.mxu1 }
 0x141   : > { %v489_v54 = vadd.f32 %v488_v51, %v443_v49  ;;  %v523_v58 = vadd.f32 %v514_v50, %v492_v52 }
 0x143   : > { %v522_v61 = vadd.f32 %v509_v60, %v489_v54 }
 0x146   : > { %v494_v53 = vpop.f32.mrf.mxu3 }
 0x147   : > { %v495_v55 = vadd.f32 %v494_v53, %v453_v44 }
 0x149   : > { %v524_v59 = vadd.f32 %v519_v47, %v495_v55 }
 0x14b   : > { %743 = vtanh.f32 %v524_v59 }
 0x14c   : > { %745 = vtanh.f32 %v523_v58 }
 0x14d   : > { %747 = vtanh.f32 %v522_v61 }
 0x14e   : > { %749 = vtanh.f32 %v521_v63 }
 0x151   : > { %v744_v0 = vpop.eup %743 }
 0x152   : > { %551 = vmatpush.msrb.mxu2 %v744_v0  ;;  %v746_v1 = vpop.eup %745 }
 0x153   : > { %v748_v2 = vpop.eup %747 }
 0x154   : > { %552 = vmatpush.msrb.mxu2 %v746_v1  ;;  %v750_v4 = vpop.eup %749 }
 0x156   : > { %553 = vmatpush.msrb.mxu2 %v748_v2 }
 0x158   : > { %554 = vmatpush.msrb.mxu2 %v750_v4 }
 0x159   : > { %671 = vmatmul.msk.f32.vlgmr.msrb.gmra.mxu2 %vm455_vm2, %v529_v3 }
 0x1dc   : > { %v556_v7 = vpop.f32.mrf.mxu2 }
 0x1dd   : > { %v557_v9 = vadd.f32 %v556_v7, %v534_v6 }
 0x1df   : > { %v562_v10 = vrot.slane %v557_v9, 6 }
 0x1e1   : > { %v565_v11 = vsel %vm564_vm3, %v559_v8, %v562_v10 }
 0x1e2   : > { %566 = vst [vmem:[%s337_s22] sm:$0xf] %v565_v11 }
 0x1e3   : > { %793 = shalt.err (!%p790_p8)
}
 0x1e4   : > { %685 = dma.vmem_to_hbm [thread:$0]  (%p924_p5), %s581_s23, 64, %s583_s24, %s568_s13  }
 0x1e5 PF: > { %p697_p9 = scmp.ge.s32.totalorder %s832_s12, 2  ;;  %s594_s28 = sand.u32 1, %s820_s30  }
 0x1e6   : > { %s595_s21 = scalar_lea.sflag [#allocation3], %s594_s28 }
 0x1e7   : > { %p692_p10 = pnand %p697_p9, %p928_p6 }
 0x1e9   : > { %p693_p11 = pneg %p692_p10 }
 0x1eb   : > { %815 = dma.done.wait (%p693_p11), %s595_s21, 64  }
 0x1ec   : > { %817 = vsyncadd (%p693_p11), %s595_s21, 4294967232  ;;  %p20_p12 = scmp.ge.s32.totalorder %s911_s15, 10   ;;  %s1068_s30 = smov %s824_s10 }
 0x1ed   : > { %s1069_s10 = smov %s828_s11  ;;  %s1070_s11 = smov %s922_s18 }
 0x1ee   : > { %s1071_s12 = smov %s911_s15  ;;  %22 = sbr.rel (!%p20_p12) target bundleno = 4 (0x4), region = 96 }
 0x1f3   :  { %601 = vsyncpa [#allocation3], 1 }
 0x1f4   :  { %603 = vsyncpa [#allocation3 + $0x1], 1 }
 0x1f5   :  { %604 = vsyncpa [#allocation4], 1 }
 0x1f6   :  { %606 = vsyncpa [#allocation4 + $0x1], 1 }

</bundles_post_ra>
